<compile_context>
chip_gen: v7x
topology: tpu7x:2x2x1
jax: 0.10.0
libtpu: 0.0.40
codegen_flags: <defaults>
</compile_context>

<pallas_src>
import jax
import jax.numpy as jnp
from jax.experimental import pallas as pl
from jax.experimental.pallas import tpu as pltpu


# ---------------- math helpers (used both in-kernel and in the wrapper) -----


def _layernorm(x, eps=1e-6):
    # matches LayerNorm(x, dim=-1): mean / biased var over last dim, no affine
    mean = jnp.mean(x, axis=-1, keepdims=True)
    var = jnp.mean((x - mean) ** 2, axis=-1, keepdims=True)
    return (x - mean) * jax.lax.rsqrt(var + eps)


def _absmax_quant(x):
    # matches absmax_quant (forward value of the straight-through estimator)
    gamma = jnp.max(jnp.abs(x), axis=-1, keepdims=True)
    q_b = 2.0 ** 7
    err = 1e-6
    x_hat = jnp.clip(x * q_b / gamma, -q_b + err, q_b - err)
    return x_hat * gamma / q_b


def _ternarize(w, eps=1e-6):
    # matches ternarize_weights: global mean of |w|, round (half-to-even, same
    # as torch.round), sign, rescale by gamma.  Used only in the wrapper prep
    # pass -- never inside the per-tile kernel body.
    gamma = jnp.mean(jnp.abs(w))
    ws = w / (gamma + eps)
    return jnp.sign(jnp.round(ws)) * gamma


def _gelu_exact(x):
    # nn.GELU() default = exact erf-based GELU
    return 0.5 * x * (1.0 + jax.lax.erf(x * 0.7071067811865476))


# ---------------- Pallas kernel --------------------------------------------


def mlp_kernel(x_ref, w1t_ref, w2t_ref, o_ref):
    # x_ref:   (tm, C) f32  tile of flattened tokens
    # w1t_ref: (C, H)  bf16 pre-ternarized c_fc weight (transposed), resident
    # w2t_ref: (H, C)  bf16 pre-ternarized c_proj weight (transposed), resident
    x = x_ref[...]

    # BitLinear c_fc: LayerNorm -> absmax activation quant -> MXU matmul
    h = _absmax_quant(_layernorm(x))
    h = jnp.dot(h.astype(jnp.bfloat16), w1t_ref[...],
                preferred_element_type=jnp.float32)

    # exact erf-GELU
    h = _gelu_exact(h)

    # BitLinear c_proj
    h = _absmax_quant(_layernorm(h))
    o_ref[...] = jnp.dot(h.astype(jnp.bfloat16), w2t_ref[...],
                         preferred_element_type=jnp.float32).astype(o_ref.dtype)


# ---------------- wrapper ---------------------------------------------------


def _round_up(n, m):
    return ((n + m - 1) // m) * m


def mlp_forward(x, w_fc, w_proj, *, tm=256):
    """x: (B, T, C) f32; w_fc: (4C, C); w_proj: (C, 4C)  (PyTorch layout)."""
    B, T, C = x.shape
    H = w_fc.shape[0]
    assert w_fc.shape == (H, C) and w_proj.shape == (C, H)
    M = B * T

    # One-time prep pass (outside the kernel, fused under jit):
    # ternarize over the FULL weight -> transpose -> bf16 cast.
    w1t = _ternarize(w_fc).T.astype(jnp.bfloat16)    # (C, H)
    w2t = _ternarize(w_proj).T.astype(jnp.bfloat16)  # (H, C)

    # Row tiling: big tiles keep the MXU busy; pad M up to a tile multiple
    # with edge rows (all ops are row-wise, padded rows are discarded).
    tm = min(tm, _round_up(M, 8))
    Mp = _round_up(M, tm)
    x2 = x.reshape(M, C)
    if Mp != M:
        x2 = jnp.pad(x2, ((0, Mp - M), (0, 0)), mode="edge")

    out = pl.pallas_call(
        mlp_kernel,
        out_shape=jax.ShapeDtypeStruct((Mp, C), x.dtype),
        grid_spec=pltpu.PrefetchScalarGridSpec(
            num_scalar_prefetch=0,
            grid=(Mp // tm,),
            in_specs=[
                pl.BlockSpec((tm, C), lambda i: (i, 0)),
                pl.BlockSpec((C, H), lambda i: (0, 0)),   # resident weight
                pl.BlockSpec((H, C), lambda i: (0, 0)),   # resident weight
            ],
            out_specs=pl.BlockSpec((tm, C), lambda i: (i, 0)),
        ),
        compiler_params=pltpu.CompilerParams(
            dimension_semantics=("parallel",),
        ),
    )(x2, w1t, w2t)
    return out[:M].reshape(B, T, C)


# ---------------- pure-JAX references (for correctness checks) -------------


def _bitlinear_ref_bf16(x, w):
    # Same quantized compute path as the kernel (bf16 MXU operands, f32 acc).
    xh = _absmax_quant(_layernorm(x)).astype(jnp.bfloat16)
    wt = _ternarize(w).T.astype(jnp.bfloat16)
    return jnp.dot(xh, wt, preferred_element_type=jnp.float32)


def mlp_ref_bf16(x, w_fc, w_proj):
    h = _bitlinear_ref_bf16(x, w_fc)
    h = _gelu_exact(h)
    return _bitlinear_ref_bf16(h, w_proj)


def _bitlinear_ref_f32(x, w):
    xh = _absmax_quant(_layernorm(x))
    wh = _ternarize(w)
    return xh @ wh.T


def mlp_ref_f32(x, w_fc, w_proj):
    # Original full-f32 semantics of the PyTorch module.
    h = _bitlinear_ref_f32(x, w_fc)
    h = _gelu_exact(h)
    return _bitlinear_ref_f32(h, w_proj)


# ---------------- main -------------------------------------------------------


if __name__ == "__main__":
    B, T, C = 2, 8, 128       # batch=2, seq=8, n_embed=128 (lane-dense C)
    H = 4 * C                 # hidden = 512

    key = jax.random.PRNGKey(0)
    kx, k1, k2 = jax.random.split(key, 3)

    x = jax.random.normal(kx, (B, T, C), dtype=jnp.float32)
    # nn.Linear default init: U(-1/sqrt(fan_in), 1/sqrt(fan_in)), bias=False
    w_fc = jax.random.uniform(k1, (H, C), jnp.float32,
                              minval=-1.0 / jnp.sqrt(C), maxval=1.0 / jnp.sqrt(C))
    w_proj = jax.random.uniform(k2, (C, H), jnp.float32,
                                minval=-1.0 / jnp.sqrt(H), maxval=1.0 / jnp.sqrt(H))

    mlp_fn = jax.jit(mlp_forward)

    out = jax.block_until_ready(mlp_fn(x, w_fc, w_proj))
    assert out.shape == (B, T, C)

    ref_q = mlp_ref_bf16(x, w_fc, w_proj)     # matches kernel's bf16 MXU path
    ref_f = mlp_ref_f32(x, w_fc, w_proj)      # original full-f32 semantics
    assert jnp.allclose(out, ref_q, atol=2e-3, rtol=2e-3), "mismatch vs bf16-path ref"
    assert jnp.allclose(out, ref_f, atol=5e-2, rtol=5e-2), "mismatch vs f32 ref"

    # Second shape: exercises multi-tile grid + row padding (M=300 -> Mp=512).
    B2, T2 = 3, 100
    x_b = jax.random.normal(jax.random.PRNGKey(1), (B2, T2, C), dtype=jnp.float32)
    out_b = jax.block_until_ready(mlp_fn(x_b, w_fc, w_proj))
    ref_b = mlp_ref_bf16(x_b, w_fc, w_proj)
    assert out_b.shape == (B2, T2, C)
    assert jnp.allclose(out_b, ref_b, atol=2e-3, rtol=2e-3), "mismatch (padded case)"

    print("KERNEL_OK")
</pallas_src>

<mosaic_0001>
module attributes {stable_mosaic.version = 11 : i64} {
  func.func @mlp_kernel(%arg0: i32, %arg1: memref<16x128xf32, #tpu.memory_space<vmem>>, %arg2: memref<128x512xbf16, #tpu.memory_space<vmem>>, %arg3: memref<512x128xbf16, #tpu.memory_space<vmem>>, %arg4: memref<16x128xf32, #tpu.memory_space<vmem>>) attributes {dimension_semantics = [#tpu.dimension_semantics<parallel>], iteration_bounds = array<i64: 1>, scalar_prefetch = 0 : i64, scratch_operands = 0 : i64, tpu.core_type = #tpu.core_type<tc>, window_params = [{transform_indices = @transform_0, window_bounds = array<i64: 16, 128>}, {pipeline_mode = #tpu.pipeline_mode<synchronous>, transform_indices = @transform_1, window_bounds = array<i64: 128, 512>}, {pipeline_mode = #tpu.pipeline_mode<synchronous>, transform_indices = @transform_2, window_bounds = array<i64: 512, 128>}, {transform_indices = @transform_3, window_bounds = array<i64: 16, 128>}]} {
    %c0 = arith.constant 0 : index
    %c0_0 = arith.constant 0 : index
    %0 = vector.load %arg1[%c0, %c0_0] : memref<16x128xf32, #tpu.memory_space<vmem>>, vector<16x128xf32>
    %cst = arith.constant dense<0.000000e+00> : vector<16xf32>
    %1 = vector.multi_reduction <add>, %0, %cst [1] : vector<16x128xf32> to vector<16xf32>
    %2 = vector.shape_cast %1 : vector<16xf32> to vector<16x1xf32>
    %cst_1 = arith.constant 1.280000e+02 : f32
    %3 = vector.broadcast %cst_1 : f32 to vector<16x1xf32>
    %4 = arith.divf %2, %3 : vector<16x1xf32>
    %5 = vector.broadcast %4 : vector<16x1xf32> to vector<16x128xf32>
    %6 = arith.subf %0, %5 : vector<16x128xf32>
    %7 = arith.mulf %6, %6 : vector<16x128xf32>
    %cst_2 = arith.constant dense<0.000000e+00> : vector<16xf32>
    %8 = vector.multi_reduction <add>, %7, %cst_2 [1] : vector<16x128xf32> to vector<16xf32>
    %9 = vector.shape_cast %8 : vector<16xf32> to vector<16x1xf32>
    %cst_3 = arith.constant 1.280000e+02 : f32
    %10 = vector.broadcast %cst_3 : f32 to vector<16x1xf32>
    %11 = arith.divf %9, %10 : vector<16x1xf32>
    %12 = vector.broadcast %4 : vector<16x1xf32> to vector<16x128xf32>
    %13 = arith.subf %0, %12 : vector<16x128xf32>
    %cst_4 = arith.constant 9.99999997E-7 : f32
    %14 = vector.broadcast %cst_4 : f32 to vector<16x1xf32>
    %15 = arith.addf %11, %14 : vector<16x1xf32>
    %16 = math.rsqrt %15 : vector<16x1xf32>
    %17 = vector.broadcast %16 : vector<16x1xf32> to vector<16x128xf32>
    %18 = arith.mulf %13, %17 : vector<16x128xf32>
    %19 = math.absf %18 : vector<16x128xf32>
    %cst_5 = arith.constant dense<0xFF800000> : vector<16xf32>
    %20 = vector.multi_reduction <maximumf>, %19, %cst_5 [1] : vector<16x128xf32> to vector<16xf32>
    %21 = vector.shape_cast %20 : vector<16xf32> to vector<16x1xf32>
    %cst_6 = arith.constant 1.280000e+02 : f32
    %22 = vector.broadcast %cst_6 : f32 to vector<16x128xf32>
    %23 = arith.mulf %18, %22 : vector<16x128xf32>
    %24 = vector.broadcast %21 : vector<16x1xf32> to vector<16x128xf32>
    %25 = arith.divf %23, %24 : vector<16x128xf32>
    %cst_7 = arith.constant -1.280000e+02 : f32
    %cst_8 = arith.constant 1.280000e+02 : f32
    %26 = vector.broadcast %cst_7 : f32 to vector<16x128xf32>
    %27 = arith.maximumf %26, %25 : vector<16x128xf32>
    %28 = vector.broadcast %cst_8 : f32 to vector<16x128xf32>
    %29 = arith.minimumf %28, %27 : vector<16x128xf32>
    %30 = vector.broadcast %21 : vector<16x1xf32> to vector<16x128xf32>
    %31 = arith.mulf %29, %30 : vector<16x128xf32>
    %cst_9 = arith.constant 1.280000e+02 : f32
    %32 = vector.broadcast %cst_9 : f32 to vector<16x128xf32>
    %33 = arith.divf %31, %32 : vector<16x128xf32>
    %34 = arith.truncf %33 : vector<16x128xf32> to vector<16x128xbf16>
    %c0_10 = arith.constant 0 : index
    %c0_11 = arith.constant 0 : index
    %35 = vector.load %arg2[%c0_10, %c0_11] : memref<128x512xbf16, #tpu.memory_space<vmem>>, vector<128x512xbf16>
    %cst_12 = arith.constant dense<0.000000e+00> : vector<16x512xf32>
    %36 = tpu.matmul %34, %35, %cst_12 {dimension_numbers = #tpu.dot_dimension_numbers<[1], [0], [0], [1], [0, 0, 1, 1], [], []>} : vector<16x128xbf16>, vector<128x512xbf16>, vector<16x512xf32> -> vector<16x512xf32>
    %cst_13 = arith.constant 5.000000e-01 : f32
    %37 = vector.broadcast %cst_13 : f32 to vector<16x512xf32>
    %38 = arith.mulf %37, %36 : vector<16x512xf32>
    %cst_14 = arith.constant 0.707106769 : f32
    %39 = vector.broadcast %cst_14 : f32 to vector<16x512xf32>
    %40 = arith.mulf %36, %39 : vector<16x512xf32>
    %41 = math.erf %40 : vector<16x512xf32>
    %cst_15 = arith.constant 1.000000e+00 : f32
    %42 = vector.broadcast %cst_15 : f32 to vector<16x512xf32>
    %43 = arith.addf %42, %41 : vector<16x512xf32>
    %44 = arith.mulf %38, %43 : vector<16x512xf32>
    %cst_16 = arith.constant dense<0.000000e+00> : vector<16xf32>
    %45 = vector.multi_reduction <add>, %44, %cst_16 [1] : vector<16x512xf32> to vector<16xf32>
    %46 = vector.shape_cast %45 : vector<16xf32> to vector<16x1xf32>
    %cst_17 = arith.constant 5.120000e+02 : f32
    %47 = vector.broadcast %cst_17 : f32 to vector<16x1xf32>
    %48 = arith.divf %46, %47 : vector<16x1xf32>
    %49 = vector.broadcast %48 : vector<16x1xf32> to vector<16x512xf32>
    %50 = arith.subf %44, %49 : vector<16x512xf32>
    %51 = arith.mulf %50, %50 : vector<16x512xf32>
    %cst_18 = arith.constant dense<0.000000e+00> : vector<16xf32>
    %52 = vector.multi_reduction <add>, %51, %cst_18 [1] : vector<16x512xf32> to vector<16xf32>
    %53 = vector.shape_cast %52 : vector<16xf32> to vector<16x1xf32>
    %cst_19 = arith.constant 5.120000e+02 : f32
    %54 = vector.broadcast %cst_19 : f32 to vector<16x1xf32>
    %55 = arith.divf %53, %54 : vector<16x1xf32>
    %56 = vector.broadcast %48 : vector<16x1xf32> to vector<16x512xf32>
    %57 = arith.subf %44, %56 : vector<16x512xf32>
    %cst_20 = arith.constant 9.99999997E-7 : f32
    %58 = vector.broadcast %cst_20 : f32 to vector<16x1xf32>
    %59 = arith.addf %55, %58 : vector<16x1xf32>
    %60 = math.rsqrt %59 : vector<16x1xf32>
    %61 = vector.broadcast %60 : vector<16x1xf32> to vector<16x512xf32>
    %62 = arith.mulf %57, %61 : vector<16x512xf32>
    %63 = math.absf %62 : vector<16x512xf32>
    %cst_21 = arith.constant dense<0xFF800000> : vector<16xf32>
    %64 = vector.multi_reduction <maximumf>, %63, %cst_21 [1] : vector<16x512xf32> to vector<16xf32>
    %65 = vector.shape_cast %64 : vector<16xf32> to vector<16x1xf32>
    %cst_22 = arith.constant 1.280000e+02 : f32
    %66 = vector.broadcast %cst_22 : f32 to vector<16x512xf32>
    %67 = arith.mulf %62, %66 : vector<16x512xf32>
    %68 = vector.broadcast %65 : vector<16x1xf32> to vector<16x512xf32>
    %69 = arith.divf %67, %68 : vector<16x512xf32>
    %cst_23 = arith.constant -1.280000e+02 : f32
    %cst_24 = arith.constant 1.280000e+02 : f32
    %70 = vector.broadcast %cst_23 : f32 to vector<16x512xf32>
    %71 = arith.maximumf %70, %69 : vector<16x512xf32>
    %72 = vector.broadcast %cst_24 : f32 to vector<16x512xf32>
    %73 = arith.minimumf %72, %71 : vector<16x512xf32>
    %74 = vector.broadcast %65 : vector<16x1xf32> to vector<16x512xf32>
    %75 = arith.mulf %73, %74 : vector<16x512xf32>
    %cst_25 = arith.constant 1.280000e+02 : f32
    %76 = vector.broadcast %cst_25 : f32 to vector<16x512xf32>
    %77 = arith.divf %75, %76 : vector<16x512xf32>
    %78 = arith.truncf %77 : vector<16x512xf32> to vector<16x512xbf16>
    %c0_26 = arith.constant 0 : index
    %c0_27 = arith.constant 0 : index
    %79 = vector.load %arg3[%c0_26, %c0_27] : memref<512x128xbf16, #tpu.memory_space<vmem>>, vector<512x128xbf16>
    %cst_28 = arith.constant dense<0.000000e+00> : vector<16x128xf32>
    %80 = tpu.matmul %78, %79, %cst_28 {dimension_numbers = #tpu.dot_dimension_numbers<[1], [0], [0], [1], [0, 0, 1, 1], [], []>} : vector<16x512xbf16>, vector<512x128xbf16>, vector<16x128xf32> -> vector<16x128xf32>
    %c0_29 = arith.constant 0 : index
    %c0_30 = arith.constant 0 : index
    %81 = vector.load %arg4[%c0_29, %c0_30] : memref<16x128xf32, #tpu.memory_space<vmem>>, vector<16x128xf32>
    tpu.vector_store %arg4[%c0_29, %c0_30], %80 {strides = array<i32>} : memref<16x128xf32, #tpu.memory_space<vmem>>, vector<16x128xf32>,
    return
  }
  func.func @transform_0(%arg0: i32) -> (i32, i32) {
    %c0_i32 = arith.constant 0 : i32
    %c0_i32_0 = arith.constant 0 : i32
    return %arg0, %c0_i32 : i32, i32
  }
  func.func @transform_1(%arg0: i32) -> (i32, i32) {
    %c0_i32 = arith.constant 0 : i32
    %c0_i32_0 = arith.constant 0 : i32
    %c0_i32_1 = arith.constant 0 : i32
    return %c0_i32, %c0_i32_0 : i32, i32
  }
  func.func @transform_2(%arg0: i32) -> (i32, i32) {
    %c0_i32 = arith.constant 0 : i32
    %c0_i32_0 = arith.constant 0 : i32
    %c0_i32_1 = arith.constant 0 : i32
    return %c0_i32, %c0_i32_0 : i32, i32
  }
  func.func @transform_3(%arg0: i32) -> (i32, i32) {
    %c0_i32 = arith.constant 0 : i32
    %c0_i32_0 = arith.constant 0 : i32
    return %arg0, %c0_i32 : i32, i32
  }
}

</mosaic_0001>

<bundles_post_ra>
// kernel: mlp_forward.1
= control target key start
LH: loop header
LB: loop body
LE: loop exit
PB: predicated region body
PF: predicated region fallthrough
CT: control target
= control target key end

     0   :  { %s1391_s0 = inlined_call_operand.vmem [shape: f32[16,128], index: 0, kind: input, shape index: {}]   ;;  %s1392_s1 = inlined_call_operand.vmem [shape: bf16[128,512], index: 1, kind: input, shape index: {}]   ;;  %s1393_s2 = inlined_call_operand.vmem [shape: bf16[512,128], index: 2, kind: input, shape index: {}]   ;;  %s1394_s3 = inlined_call_operand.hbm [shape: f32[16,128], index: 3, kind: output, shape index: {}]  }
   0x1   :  { %v16_v0 = vld [vmem:[%s1391_s0] sm:$0xff]  ;;  %v17_v1 = vld [vmem:[%s1391_s0 + $0x8] sm:$0xff] }
   0x2   :  { %18 = vadd.xlane.f32.xlu0 %v16_v0 }
   0x6   :  { %20 = vadd.xlane.f32.xlu0 %v17_v1 }
   0x7   :  { %8 = vsyncpa [#allocation3], 0  ;;  %v983_v10 = vld [vmem:[%s1392_s1 + $0x4] ss:$16 sps:$4 sm:$0xff]   ;;  %v985_v11 = vld [vmem:[%s1392_s1 + $0xc] ss:$16 sps:$4 sm:$0xff]  }
   0x8   :  { %v987_v12 = vld [vmem:[%s1392_s1] ss:$16 sps:$4 sm:$0xff]   ;;  %v988_v13 = vld [vmem:[%s1392_s1 + $0x8] ss:$16 sps:$4 sm:$0xff]   ;;  %v989_v14 = vld [vmem:[%s1392_s1 + $0x24] ss:$16 sps:$4 sm:$0xff]   ;;  %254 = vmatprep.subr.bf16.mxu0 %v983_v10  ;;  %297 = vmatprep.subr.bf16.mxu1 %v985_v11 }
   0x9   :  { %v991_v15 = vld [vmem:[%s1392_s1 + $0x2c] ss:$16 sps:$4 sm:$0xff]   ;;  %255 = vmatpush1.bf16.msra.mxu0 %v987_v12  ;;  %298 = vmatpush1.bf16.msra.mxu1 %v988_v13  ;;  %v993_v16 = vld [vmem:[%s1392_s1 + $0x20] ss:$16 sps:$4 sm:$0xff]   ;;  %v994_v17 = vld [vmem:[%s1392_s1 + $0x28] ss:$16 sps:$4 sm:$0xff]  }
   0xa   :  { %256 = vmatprep.subr.bf16.mxu0 %v989_v14  ;;  %299 = vmatprep.subr.bf16.mxu1 %v991_v15  ;;  %v995_v30 = vld [vmem:[%s1392_s1 + $0x44] ss:$16 sps:$4 sm:$0xff]   ;;  %v997_v31 = vld [vmem:[%s1392_s1 + $0x4c] ss:$16 sps:$4 sm:$0xff]   ;;  %v999_v32 = vld [vmem:[%s1392_s1 + $0x40] ss:$16 sps:$4 sm:$0xff]  }
   0xb   :  { %v1000_v33 = vld [vmem:[%s1392_s1 + $0x48] ss:$16 sps:$4 sm:$0xff]   ;;  %v1001_v34 = vld [vmem:[%s1392_s1 + $0x64] ss:$16 sps:$4 sm:$0xff]   ;;  %v1003_v35 = vld [vmem:[%s1392_s1 + $0x6c] ss:$16 sps:$4 sm:$0xff]  }
   0xc   :  { %v1005_v36 = vld [vmem:[%s1392_s1 + $0x60] ss:$16 sps:$4 sm:$0xff]   ;;  %v1006_v37 = vld [vmem:[%s1392_s1 + $0x68] ss:$16 sps:$4 sm:$0xff]   ;;  %v1007_v38 = vld [vmem:[%s1392_s1 + $0x84] ss:$16 sps:$4 sm:$0xff]  }
   0xd   :  { %257 = vmatpush1.bf16.msra.mxu0 %v993_v16  ;;  %300 = vmatpush1.bf16.msra.mxu1 %v994_v17  ;;  %v1009_v39 = vld [vmem:[%s1392_s1 + $0x8c] ss:$16 sps:$4 sm:$0xff]   ;;  %v1011_v40 = vld [vmem:[%s1392_s1 + $0x80] ss:$16 sps:$4 sm:$0xff]   ;;  %v1012_v41 = vld [vmem:[%s1392_s1 + $0x88] ss:$16 sps:$4 sm:$0xff]  }
   0xe   :  { %258 = vmatprep.subr.bf16.mxu0 %v995_v30  ;;  %301 = vmatprep.subr.bf16.mxu1 %v997_v31  ;;  %v1013_v42 = vld [vmem:[%s1392_s1 + $0xa4] ss:$16 sps:$4 sm:$0xff]   ;;  %v1015_v43 = vld [vmem:[%s1392_s1 + $0xac] ss:$16 sps:$4 sm:$0xff]   ;;  %v1017_v44 = vld [vmem:[%s1392_s1 + $0xa0] ss:$16 sps:$4 sm:$0xff]  }
   0xf   :  { %v1018_v45 = vld [vmem:[%s1392_s1 + $0xa8] ss:$16 sps:$4 sm:$0xff]   ;;  %v1019_v46 = vld [vmem:[%s1392_s1 + $0xc4] ss:$16 sps:$4 sm:$0xff]   ;;  %v1021_v47 = vld [vmem:[%s1392_s1 + $0xcc] ss:$16 sps:$4 sm:$0xff]  }
  0x10   :  { %v1023_v48 = vld [vmem:[%s1392_s1 + $0xc0] ss:$16 sps:$4 sm:$0xff]   ;;  %v1024_v49 = vld [vmem:[%s1392_s1 + $0xc8] ss:$16 sps:$4 sm:$0xff]   ;;  %v1025_v50 = vld [vmem:[%s1392_s1 + $0xe4] ss:$16 sps:$4 sm:$0xff]  }
  0x11   :  { %259 = vmatpush1.bf16.msra.mxu0 %v999_v32  ;;  %302 = vmatpush1.bf16.msra.mxu1 %v1000_v33  ;;  %v1027_v51 = vld [vmem:[%s1392_s1 + $0xec] ss:$16 sps:$4 sm:$0xff]   ;;  %v1029_v52 = vld [vmem:[%s1392_s1 + $0xe0] ss:$16 sps:$4 sm:$0xff]   ;;  %v1030_v53 = vld [vmem:[%s1392_s1 + $0xe8] ss:$16 sps:$4 sm:$0xff]  }
  0x12   :  { %260 = vmatprep.subr.bf16.mxu0 %v1001_v34  ;;  %303 = vmatprep.subr.bf16.mxu1 %v1003_v35  ;;  %v1125_v54 = vmov 0  }
  0x13   :  { %286 = vmatprep.mubr.bf16.mxu0 %v1125_v54  ;;  %329 = vmatprep.mubr.bf16.mxu1 %v1125_v54 }
  0x15   :  { %261 = vmatpush1.bf16.msra.mxu0 %v1005_v36  ;;  %304 = vmatpush1.bf16.msra.mxu1 %v1006_v37 }
  0x16   :  { %262 = vmatprep.subr.bf16.mxu0 %v1007_v38  ;;  %305 = vmatprep.subr.bf16.mxu1 %v1009_v39 }
  0x19   :  { %263 = vmatpush1.bf16.msra.mxu0 %v1011_v40  ;;  %306 = vmatpush1.bf16.msra.mxu1 %v1012_v41 }
  0x1a   :  { %264 = vmatprep.subr.bf16.mxu0 %v1013_v42  ;;  %307 = vmatprep.subr.bf16.mxu1 %v1015_v43 }
  0x1d   :  { %265 = vmatpush1.bf16.msra.mxu0 %v1017_v44  ;;  %308 = vmatpush1.bf16.msra.mxu1 %v1018_v45 }
  0x1e   :  { %266 = vmatprep.subr.bf16.mxu0 %v1019_v46  ;;  %309 = vmatprep.subr.bf16.mxu1 %v1021_v47 }
  0x21   :  { %267 = vmatpush1.bf16.msra.mxu0 %v1023_v48  ;;  %310 = vmatpush1.bf16.msra.mxu1 %v1024_v49 }
  0x22   :  { %268 = vmatprep.subr.bf16.mxu0 %v1025_v50  ;;  %311 = vmatprep.subr.bf16.mxu1 %v1027_v51 }
  0x25   :  { %269 = vmatpush1.bf16.msra.mxu0 %v1029_v52  ;;  %312 = vmatpush1.bf16.msra.mxu1 %v1030_v53 }
  0x8f   :  { %v19_v2 = vpop.xlane.xlu0 %18 }
  0x90   :  { %v23_v3 = vmul.f32 0.0078125, %v19_v2 }
  0x92   :  { %v25_v4 = vsub.f32 %v16_v0, %v23_v3 }
  0x93   :  { %v21_v5 = vpop.xlane.xlu0 %20 }
  0x94   :  { %v24_v6 = vmul.f32 0.0078125, %v21_v5  ;;  %v27_v7 = vmul.f32 %v25_v4, %v25_v4 }
  0x96   :  { %v26_v8 = vsub.f32 %v17_v1, %v24_v6  ;;  %29 = vadd.xlane.f32.xlu1 %v27_v7 }
  0x98   :  { %v28_v9 = vmul.f32 %v26_v8, %v26_v8 }
  0x9a   :  { %31 = vadd.xlane.f32.xlu1 %v28_v9 }
 0x123   :  { %v30_v18 = vpop.xlane.xlu1 %29 }
 0x124   :  { %v33_v19 = vmul.f32 0.0078125, %v30_v18 }
 0x126   :  { %v35_v20 = vadd.f32 1e-06, %v33_v19 }
 0x127   :  { %v32_v21 = vpop.xlane.xlu1 %31 }
 0x128   :  { %1063 = vrsqrt.f32 %v35_v20  ;;  %v34_v22 = vmul.f32 0.0078125, %v32_v21 }
 0x12a   :  { %v36_v23 = vadd.f32 1e-06, %v34_v22 }
 0x12c   :  { %1065 = vrsqrt.f32 %v36_v23 }
 0x132   :  { %v1064_v24 = vpop.eup %1063 }
 0x133   :  { %v39_v25 = vmul.f32 %v1064_v24, %v25_v4 }
 0x135   :  { %v41_v26 = vand.u32 2147483647, %v39_v25  ;;  %v47_v57 = vmul.f32 128.0, %v39_v25 }
 0x136   :  { %v1066_v27 = vpop.eup %1065 }
 0x137   :  { %43 = vmax.xlane.f32.xlu0 %v41_v26  ;;  %v40_v28 = vmul.f32 %v1066_v27, %v26_v8 }
 0x139   :  { %v42_v29 = vand.u32 2147483647, %v40_v28  ;;  %v48_v60 = vmul.f32 128.0, %v40_v28 }
 0x13b   :  { %45 = vmax.xlane.f32.xlu1 %v42_v29 }
 0x1c4   :  { %v44_v55 = vpop.xlane.xlu0 %43 }
 0x1c5   :  { %1067 = vrcp.f32 %v44_v55 }
 0x1c8   :  { %v46_v56 = vpop.xlane.xlu1 %45 }
 0x1c9   :  { %1069 = vrcp.f32 %v46_v56 }
 0x1cf   :  { %v1068_v58 = vpop.eup %1067 }
 0x1d0   :  { %v50_v59 = vmul.f32 %v1068_v58, %v47_v57 }
 0x1d2   :  { %v861_v61 = vclamps-f32 %v50_v59, 128.0 }
 0x1d3   :  { %v1070_v62 = vpop.eup %1069 }
 0x1d4   :  { %v52_v63 = vmul.f32 %v1070_v62, %v48_v60  ;;  %v57_v0 = vmul.f32 %v861_v61, %v44_v55 }
 0x1d6   :  { %v862_v1 = vclamps-f32 %v52_v63, 128.0  ;;  %v59_v3 = vmul.f32 0.0078125, %v57_v0 }
 0x1d8   :  { %v58_v2 = vmul.f32 %v862_v1, %v46_v56 }
 0x1da   :  { %v60_v4 = vmul.f32 0.0078125, %v58_v2 }
 0x1dc   :  { %v61_v5 = vpack.c.bf16 %v60_v4, %v59_v3 }
 0x1de   :  { %287 = vmatmul.mubr.bf16.vlgmr.msra.gmra.mrb[0].mxu0 %v61_v5  ;;  %330 = vmatmul.mubr.bf16.vlgmr.msra.gmra.mrb[0].mxu1 %v61_v5 }
 0x2b1   :  { %v288_v6 = vpop.f32.mrb[0].mxu0  ;;  %v331_v7 = vpop.f32.mrb[0].mxu1 }
 0x2b2   :  { %v348_v8 = vmul.f32 0.70710677, %v288_v6  ;;  %v350_v9 = vmul.f32 0.70710677, %v331_v7  ;;  %v290_v10 = vpop.f32.mrb[1].mxu0  ;;  %v333_v11 = vpop.f32.mrb[1].mxu1 }
 0x2b3   :  { %v349_v12 = vmul.f32 0.70710677, %v290_v10  ;;  %v292_v13 = vpop.f32.mrb[2].mxu0  ;;  %v335_v14 = vpop.f32.mrb[2].mxu1  ;;  %v351_v15 = vmul.f32 0.70710677, %v333_v11 }
 0x2b4   :  { %1071 = verf.f32 %v348_v8  ;;  %v352_v16 = vmul.f32 0.70710677, %v292_v13  ;;  %v294_v17 = vpop.f32.mrb[3].mxu0  ;;  %v354_v18 = vmul.f32 0.70710677, %v335_v14  ;;  %v337_v19 = vpop.f32.mrb[3].mxu1 }
 0x2b5   :  { %1073 = verf.f32 %v350_v9  ;;  %v353_v20 = vmul.f32 0.70710677, %v294_v17  ;;  %v355_v21 = vmul.f32 0.70710677, %v337_v19  ;;  %v340_v24 = vmul.f32 0.5, %v288_v6 }
 0x2b6   :  { %1075 = verf.f32 %v349_v12  ;;  %v341_v30 = vmul.f32 0.5, %v290_v10  ;;  %v342_v33 = vmul.f32 0.5, %v331_v7  ;;  %v344_v37 = vmul.f32 0.5, %v292_v13 }
 0x2b7   :  { %1077 = verf.f32 %v351_v15  ;;  %v343_v41 = vmul.f32 0.5, %v333_v11  ;;  %v345_v42 = vmul.f32 0.5, %v294_v17  ;;  %v346_v48 = vmul.f32 0.5, %v335_v14 }
 0x2b8   :  { %1079 = verf.f32 %v352_v16  ;;  %v347_v54 = vmul.f32 0.5, %v337_v19 }
 0x2b9   :  { %1081 = verf.f32 %v354_v18 }
 0x2ba   :  { %1083 = verf.f32 %v353_v20 }
 0x2bb   :  { %1085 = verf.f32 %v355_v21 }
 0x2be   :  { %v1072_v22 = vpop.eup %1071 }
 0x2bf   :  { %v1074_v23 = vpop.eup %1073  ;;  %v364_v25 = vadd.f32 1.0, %v1072_v22  ;;  %v1031_v22 = vld [vmem:[%s1393_s2 + $0x40] sm:$0xff]  }
 0x2c0   :  { %v1076_v26 = vpop.eup %1075  ;;  %v366_v27 = vadd.f32 1.0, %v1074_v23  ;;  %v1032_v23 = vld [vmem:[%s1393_s2 + $0xc0] sm:$0xff]   ;;  %935 = vmatprep.subr.bf16.mxu0 %v1031_v22 }
 0x2c1   :  { %v1078_v28 = vpop.eup %1077  ;;  %v372_v29 = vmul.f32 %v364_v25, %v340_v24  ;;  %v365_v31 = vadd.f32 1.0, %v1076_v26  ;;  %v1033_v24 = vld [vmem:[%s1393_s2] sm:$0xff]   ;;  %v1035_v26 = vld [vmem:[%s1393_s2 + $0x48] sm:$0xff]   ;;  %957 = vmatprep.subr.bf16.mxu1 %v1032_v23 }
 0x2c2   :  { %v1080_v32 = vpop.eup %1079  ;;  %v367_v36 = vadd.f32 1.0, %v1078_v28  ;;  %v374_v40 = vmul.f32 %v366_v27, %v342_v33  ;;  %v1034_v25 = vld [vmem:[%s1393_s2 + $0x80] sm:$0xff]   ;;  %v1036_v27 = vld [vmem:[%s1393_s2 + $0xc8] sm:$0xff]   ;;  %936 = vmatpush3.bf16.msra.mxu0 %v1033_v24 }
 0x2c3   :  { %v1082_v34 = vpop.eup %1081  ;;  %v373_v35 = vmul.f32 %v365_v31, %v341_v30  ;;  %v368_v38 = vadd.f32 1.0, %v1080_v32  ;;  %958 = vmatpush3.bf16.msra.mxu1 %v1034_v25  ;;  %v1037_v28 = vld [vmem:[%s1393_s2 + $0x8] sm:$0xff]   ;;  %937 = vmatprep.subr.bf16.mxu0 %v1035_v26 }
 0x2c4   :  { %v1084_v39 = vpop.eup %1083  ;;  %v370_v45 = vadd.f32 1.0, %v1082_v34  ;;  %v375_v51 = vmul.f32 %v367_v36, %v343_v41  ;;  %959 = vmatprep.subr.bf16.mxu1 %v1036_v27 }
 0x2c5   :  { %v1086_v43 = vpop.eup %1085  ;;  %v376_v44 = vmul.f32 %v368_v38, %v344_v37  ;;  %v369_v46 = vadd.f32 1.0, %v1084_v39  ;;  %v380_v47 = vadd.f32 %v373_v35, %v372_v29 }
 0x2c6   :  { %v371_v50 = vadd.f32 1.0, %v1086_v43  ;;  %v378_v53 = vmul.f32 %v370_v45, %v346_v48  ;;  %938 = vmatpush3.bf16.msra.mxu0 %v1037_v28  ;;  %v1039_v48 = vld [vmem:[%s1393_s2 + $0x50] sm:$0xff]  }
 0x2c7   :  { %v377_v49 = vmul.f32 %v369_v46, %v345_v42  ;;  %v381_v52 = vadd.f32 %v380_v47, %v374_v40  ;;  %939 = vmatprep.subr.bf16.mxu0 %v1039_v48 }
 0x2c8   :  { %v379_v57 = vmul.f32 %v371_v50, %v347_v54  ;;  %v1041_v50 = vld [vmem:[%s1393_s2 + $0x10] sm:$0xff]   ;;  %v1045_v54 = vld [vmem:[%s1393_s2 + $0x18] sm:$0xff]  }
 0x2c9   :  { %v382_v55 = vadd.f32 %v381_v52, %v375_v51  ;;  %v385_v56 = vadd.f32 %v377_v49, %v376_v44  ;;  %v1043_v52 = vld [vmem:[%s1393_s2 + $0x58] sm:$0xff]  }
 0x2ca   :  { %940 = vmatpush3.bf16.msra.mxu0 %v1041_v50 }
 0x2cb   :  { %383 = vadd.xlane.f32.xlu0 %v382_v55  ;;  %v386_v58 = vadd.f32 %v385_v56, %v378_v53  ;;  %v1046_v55 = vld [vmem:[%s1393_s2 + $0x98] sm:$0xff]   ;;  %941 = vmatprep.subr.bf16.mxu0 %v1043_v52  ;;  %v1047_v56 = vld [vmem:[%s1393_s2 + $0x60] sm:$0xff]  }
 0x2cd   :  { %v387_v59 = vadd.f32 %v386_v58, %v379_v57  ;;  %v1049_v58 = vld [vmem:[%s1393_s2 + $0x20] sm:$0xff]  }
 0x2ce   :  { %942 = vmatpush3.bf16.msra.mxu0 %v1045_v54 }
 0x2cf   :  { %388 = vadd.xlane.f32.xlu1 %v387_v59  ;;  %v1050_v59 = vld [vmem:[%s1393_s2 + $0xa0] sm:$0xff]   ;;  %943 = vmatprep.subr.bf16.mxu0 %v1047_v56 }
 0x2d2   :  { %944 = vmatpush3.bf16.msra.mxu0 %v1049_v58 }
 0x358   :  { %v384_v60 = vpop.xlane.xlu0 %383 }
 0x359   :  { %v391_v61 = vmul.f32 0.001953125, %v384_v60  ;;  %v1051_v60 = vld [vmem:[%s1393_s2 + $0x68] sm:$0xff]  }
 0x35a   :  { %945 = vmatprep.subr.bf16.mxu0 %v1051_v60 }
 0x35b   :  { %v393_v62 = vsub.f32 %v372_v29, %v391_v61  ;;  %v394_v63 = vsub.f32 %v373_v35, %v391_v61  ;;  %v395_v0 = vsub.f32 %v374_v40, %v391_v61  ;;  %v396_v2 = vsub.f32 %v375_v51, %v391_v61  ;;  %v1038_v29 = vld [vmem:[%s1393_s2 + $0x88] sm:$0xff]   ;;  %v1042_v51 = vld [vmem:[%s1393_s2 + $0x90] sm:$0xff]  }
 0x35c   :  { %v389_v1 = vpop.xlane.xlu1 %388  ;;  %960 = vmatpush3.bf16.msra.mxu1 %v1038_v29  ;;  %v1052_v61 = vld [vmem:[%s1393_s2 + $0xe8] sm:$0xff]  }
 0x35d   :  { %v392_v3 = vmul.f32 0.001953125, %v389_v1  ;;  %v401_v4 = vmul.f32 %v393_v62, %v393_v62  ;;  %v402_v5 = vmul.f32 %v394_v63, %v394_v63  ;;  %v403_v6 = vmul.f32 %v395_v0, %v395_v0  ;;  %v1056_v1 = vld [vmem:[%s1393_s2 + $0xf0] sm:$0xff]  }
 0x35e   :  { %v404_v11 = vmul.f32 %v396_v2, %v396_v2 }
 0x35f   :  { %v397_v7 = vsub.f32 %v376_v44, %v392_v3  ;;  %v398_v8 = vsub.f32 %v377_v49, %v392_v3  ;;  %v409_v9 = vadd.f32 %v402_v5, %v401_v4  ;;  %v399_v10 = vsub.f32 %v378_v53, %v392_v3  ;;  %v1040_v49 = vld [vmem:[%s1393_s2 + $0xd0] sm:$0xff]   ;;  %v1044_v53 = vld [vmem:[%s1393_s2 + $0xd8] sm:$0xff]  }
 0x360   :  { %v400_v13 = vsub.f32 %v379_v57, %v392_v3  ;;  %961 = vmatprep.subr.bf16.mxu1 %v1040_v49  ;;  %v1048_v57 = vld [vmem:[%s1393_s2 + $0xe0] sm:$0xff]   ;;  %v1058_v3 = vld [vmem:[%s1393_s2 + $0xb0] sm:$0xff]   ;;  %v1059_v4 = vld [vmem:[%s1393_s2 + $0x78] sm:$0xff]  }
 0x361   :  { %v410_v12 = vadd.f32 %v409_v9, %v403_v6  ;;  %v405_v14 = vmul.f32 %v397_v7, %v397_v7  ;;  %v406_v15 = vmul.f32 %v398_v8, %v398_v8  ;;  %v407_v17 = vmul.f32 %v399_v10, %v399_v10  ;;  %962 = vmatpush3.bf16.msra.mxu1 %v1042_v51  ;;  %v1060_v5 = vld [vmem:[%s1393_s2 + $0xf8] sm:$0xff]  }
 0x362   :  { %v408_v19 = vmul.f32 %v400_v13, %v400_v13  ;;  %963 = vmatprep.subr.bf16.mxu1 %v1044_v53  ;;  %v1061_v6 = vld [vmem:[%s1393_s2 + $0x38] sm:$0xff]  }
 0x363   :  { %v411_v16 = vadd.f32 %v410_v12, %v404_v11  ;;  %v414_v18 = vadd.f32 %v406_v15, %v405_v14 }
 0x365   :  { %412 = vadd.xlane.f32.xlu0 %v411_v16  ;;  %v415_v20 = vadd.f32 %v414_v18, %v407_v17  ;;  %964 = vmatpush3.bf16.msra.mxu1 %v1046_v55 }
 0x366   :  { %965 = vmatprep.subr.bf16.mxu1 %v1048_v57 }
 0x367   :  { %v416_v21 = vadd.f32 %v415_v20, %v408_v19 }
 0x369   :  { %417 = vadd.xlane.f32.xlu1 %v416_v21  ;;  %966 = vmatpush3.bf16.msra.mxu1 %v1050_v59 }
 0x36a   :  { %967 = vmatprep.subr.bf16.mxu1 %v1052_v61 }
 0x3f2   :  { %v413_v30 = vpop.xlane.xlu0 %412 }
 0x3f3   :  { %v419_v31 = vmul.f32 0.001953125, %v413_v30 }
 0x3f5   :  { %v421_v32 = vadd.f32 1e-06, %v419_v31 }
 0x3f6   :  { %v418_v33 = vpop.xlane.xlu1 %417 }
 0x3f7   :  { %1087 = vrsqrt.f32 %v421_v32  ;;  %v420_v34 = vmul.f32 0.001953125, %v418_v33 }
 0x3f9   :  { %v422_v35 = vadd.f32 1e-06, %v420_v34 }
 0x3fb   :  { %1089 = vrsqrt.f32 %v422_v35 }
 0x401   :  { %v1088_v36 = vpop.eup %1087 }
 0x402   :  { %v1275_v37 = vmul.f32 %v1088_v36, %v393_v62  ;;  %v1277_v38 = vmul.f32 %v1088_v36, %v394_v63  ;;  %v1279_v39 = vmul.f32 %v1088_v36, %v395_v0  ;;  %v1281_v40 = vmul.f32 %v1088_v36, %v396_v2  ;;  %v1053_v62 = vld [vmem:[%s1393_s2 + $0x28] sm:$0xff]   ;;  %v1055_v0 = vld [vmem:[%s1393_s2 + $0x70] sm:$0xff]  }
 0x403   :  { %v1054_v63 = vld [vmem:[%s1393_s2 + $0xa8] sm:$0xff]   ;;  %946 = vmatpush3.bf16.msra.mxu0 %v1053_v62  ;;  %v1057_v2 = vld [vmem:[%s1393_s2 + $0x30] sm:$0xff]  }
 0x404   :  { %1122 = vmaxabs.init.f32.vacc1 %v1275_v37, %v1279_v39  ;;  %968 = vmatpush3.bf16.msra.mxu1 %v1054_v63  ;;  %947 = vmatprep.subr.bf16.mxu0 %v1055_v0  ;;  %v452_v11 = vmul.f32 128.0, %v1277_v38  ;;  %v453_v12 = vmul.f32 128.0, %v1279_v39 }
 0x405   :  { %v1090_v41 = vpop.eup %1089  ;;  %969 = vmatprep.subr.bf16.mxu1 %v1056_v1 }
 0x406   :  { %v1285_v42 = vmul.f32 %v1090_v41, %v397_v7  ;;  %v1287_v43 = vmul.f32 %v1090_v41, %v398_v8  ;;  %1123 = vmaxabs.f32.vacc1 %v1277_v38, %v1281_v40  ;;  %v1291_v44 = vmul.f32 %v1090_v41, %v399_v10  ;;  %v1062_v7 = vld [vmem:[%s1393_s2 + $0xb8] sm:$0xff]   ;;  %s1126_s2 = smov [#allocation2]  }
 0x407   :  { %v1293_v45 = vmul.f32 %v1090_v41, %v400_v13  ;;  %948 = vmatpush3.bf16.msra.mxu0 %v1057_v2  ;;  %v451_v10 = vmul.f32 128.0, %v1275_v37  ;;  %v454_v13 = vmul.f32 128.0, %v1281_v40  ;;  %s850_s28 = sshll.u32 %s1126_s2, 4  ;;  %s851_s28 = int_to_ptr.vmem [resolvable:$true] %s850_s28 }
 0x408   :  { %v1124_v46 = vmovacc.low.even.vacc1  ;;  %1119 = vmaxabs.init.f32.vacc0 %v1285_v42, %v1291_v44  ;;  %970 = vmatpush3.bf16.msra.mxu1 %v1058_v3  ;;  %949 = vmatprep.subr.bf16.mxu0 %v1059_v4  ;;  %v455_v24 = vmul.f32 128.0, %v1285_v42  ;;  %v456_v25 = vmul.f32 128.0, %v1287_v43  ;;  %s1095_s29 = scalar_lea.vmem %s851_s28, 256  ;;  %p1100_p1 = scmp.lt.s32.totalorder %s851_s28, %s851_s28 }
 0x409   :  { %971 = vmatprep.subr.bf16.mxu1 %v1060_v5  ;;  %v457_v26 = vmul.f32 128.0, %v1291_v44  ;;  %v458_v27 = vmul.f32 128.0, %v1293_v45  ;;  %p1096_p0 = scmp.ne.s32.totalorder %s851_s28, %s1095_s29  ;;  %p1101_p2 = scmp.lt.s32.totalorder %s1095_s29, %s1095_s29 }
 0x40a   :  { %444 = vmax.xlane.f32.xlu0 %v1124_v46  ;;  %1120 = vmaxabs.f32.vacc0 %v1287_v43, %v1293_v45 }
 0x40b   :  { %950 = vmatpush3.bf16.msra.mxu0 %v1061_v6  ;;  %p1102_p3 = por %p1101_p2, %p1100_p1 }
 0x40c   :  { %v1121_v47 = vmovacc.low.even.vacc0  ;;  %972 = vmatpush3.bf16.msra.mxu1 %v1062_v7 }
 0x40d   :  { %p1103_p4 = pnand %p1102_p3, %p1096_p0 }
 0x40e   :  { %449 = vmax.xlane.f32.xlu1 %v1121_v47 }
 0x497   :  { %v445_v8 = vpop.xlane.xlu0 %444 }
 0x498   :  { %1091 = vrcp.f32 %v445_v8 }
 0x49b   :  { %v450_v9 = vpop.xlane.xlu1 %449 }
 0x49c   :  { %1093 = vrcp.f32 %v450_v9 }
 0x4a2   :  { %v1092_v14 = vpop.eup %1091 }
 0x4a3   :  { %v460_v15 = vmul.f32 %v1092_v14, %v451_v10  ;;  %v461_v16 = vmul.f32 %v1092_v14, %v452_v11  ;;  %v462_v17 = vmul.f32 %v1092_v14, %v453_v12  ;;  %v463_v18 = vmul.f32 %v1092_v14, %v454_v13 }
 0x4a5   :  { %v895_v19 = vclamps-f32 %v460_v15, 128.0  ;;  %v896_v20 = vclamps-f32 %v461_v16, 128.0  ;;  %v897_v21 = vclamps-f32 %v462_v17, 128.0  ;;  %v898_v22 = vclamps-f32 %v463_v18, 128.0 }
 0x4a6   :  { %v1094_v23 = vpop.eup %1093 }
 0x4a7   :  { %v465_v28 = vmul.f32 %v1094_v23, %v455_v24  ;;  %v466_v29 = vmul.f32 %v1094_v23, %v456_v25  ;;  %v467_v30 = vmul.f32 %v1094_v23, %v457_v26  ;;  %v468_v31 = vmul.f32 %v1094_v23, %v458_v27 }
 0x4a8   :  { %v485_v32 = vmul.f32 %v895_v19, %v445_v8  ;;  %v486_v33 = vmul.f32 %v896_v20, %v445_v8  ;;  %v487_v34 = vmul.f32 %v897_v21, %v445_v8  ;;  %v488_v35 = vmul.f32 %v898_v22, %v445_v8 }
 0x4a9   :  { %v899_v36 = vclamps-f32 %v465_v28, 128.0  ;;  %v900_v37 = vclamps-f32 %v466_v29, 128.0  ;;  %v901_v38 = vclamps-f32 %v467_v30, 128.0  ;;  %v902_v39 = vclamps-f32 %v468_v31, 128.0 }
 0x4aa   :  { %v493_v46 = vmul.f32 0.0078125, %v485_v32  ;;  %v495_v44 = vmul.f32 0.0078125, %v487_v34  ;;  %v494_v47 = vmul.f32 0.0078125, %v486_v33  ;;  %v496_v45 = vmul.f32 0.0078125, %v488_v35 }
 0x4ab   :  { %v489_v40 = vmul.f32 %v899_v36, %v450_v9  ;;  %v490_v41 = vmul.f32 %v900_v37, %v450_v9  ;;  %v491_v42 = vmul.f32 %v901_v38, %v450_v9  ;;  %v492_v43 = vmul.f32 %v902_v39, %v450_v9 }
 0x4ad   :  { %v497_v48 = vmul.f32 0.0078125, %v489_v40  ;;  %v499_v49 = vmul.f32 0.0078125, %v491_v42  ;;  %v498_v50 = vmul.f32 0.0078125, %v490_v41  ;;  %v500_v51 = vmul.f32 0.0078125, %v492_v43 }
 0x4af   :  { %v502_v52 = vpack.c.bf16 %v498_v50, %v494_v47  ;;  %v504_v53 = vpack.c.bf16 %v500_v51, %v496_v45  ;;  %v501_v54 = vpack.c.bf16 %v497_v48, %v493_v46  ;;  %v503_v55 = vpack.c.bf16 %v499_v49, %v495_v44 }
 0x4b1   :  { %793 = vmatprep.mubr.bf16.mxu0 %v502_v52  ;;  %834 = vmatprep.mubr.bf16.mxu1 %v504_v53 }
 0x4b2   :  { %794 = vmatmul.mubr.bf16.vlgmr.msra.gmra.mrb[4].mxu0 %v501_v54  ;;  %835 = vmatmul.mubr.bf16.vlgmr.msra.gmra.mrb[4].mxu1 %v503_v55 }
 0x585   :  { %v951_v56 = vpop.f32.mrb[4].mxu0  ;;  %v973_v57 = vpop.f32.mrb[4].mxu1 }
 0x586   :  { %v952_v58 = vpop.f32.mrb[5].mxu0  ;;  %v974_v59 = vpop.f32.mrb[5].mxu1 }
 0x587   :  { %v953_v60 = vadd.f32 %v952_v58, %v951_v56  ;;  %v975_v61 = vadd.f32 %v974_v59, %v973_v57  ;;  %v954_v62 = vpop.f32.mrb[6].mxu0  ;;  %v976_v63 = vpop.f32.mrb[6].mxu1 }
 0x588   :  { %v955_v0 = vpop.f32.mrb[7].mxu0  ;;  %v977_v1 = vpop.f32.mrb[7].mxu1 }
 0x589   :  { %v837_v2 = vadd.f32 %v975_v61, %v953_v60  ;;  %v956_v3 = vadd.f32 %v955_v0, %v954_v62  ;;  %v978_v4 = vadd.f32 %v977_v1, %v976_v63 }
 0x58b   :  { %843 = vst [vmem:[#allocation2] sm:$0xff] %v837_v2  ;;  %v840_v5 = vadd.f32 %v978_v4, %v956_v3 }
 0x58d   :  { %844 = vst [vmem:[#allocation2 + $0x8] sm:$0xff] %v840_v5 }
 0x58e   :  { %1106 = shalt.err (!%p1103_p4)
}
 0x58f   :  { %s1107_s5 = scalar_lea.hbm %s1394_s3, 256 }
 0x590   :  { %p1108_p5 = scmp.ne.s32.totalorder %s1394_s3, %s1107_s5  ;;  %p1111_p6 = scmp.lt.u32.totalorder %s1107_s5, %s1394_s3 }
 0x592   :  { %p1113_p7 = pnand %p1111_p6, %p1108_p5 }
 0x594   :  { %1116 = shalt.err (!%p1113_p7)
}
 0x595   :  { %s1127_s10 = smov 128   ;;  %s1128_s11 = smov 8  }
 0x596   :  { %856 = dma.vmem_to_hbm [thread:$0]  %s851_s28, 256, %s1394_s3, [#allocation3], %s1127_s10, %s1127_s10, %s1128_s11  }
 0x597   :  { %1117 = dma.done.wait [#allocation3], 256  }
 0x598   :  { %1118 = vsyncadd [#allocation3], 4294967040 }
 0x599   :  { %860 = vsyncpa [#allocation3], 1 }

</bundles_post_ra>
